<compile_context>
chip_gen: v5e
topology: v5e:2x2
jax: 0.10.0
libtpu: 0.0.40
codegen_flags: <defaults>
</compile_context>

<pallas_src>
import math

import jax
import jax.numpy as jnp
import numpy as np
from jax.experimental import pallas as pl
from jax.experimental.pallas import tpu as pltpu

_LANES = 128
_SUBLANES = 8
_CHUNK_ROWS = 512            # compute chunk inside a DMA block (bounds intermediates)
_SMALL_REDUCE_ELEMS = 1 << 14  # below this, plain-JAX reduction beats kernel dispatch

_CFG = None


def _chip_config():
    """(max_block_rows, vmem_limit_bytes): chip-aware, conservative fallback is v7x-safe."""
    global _CFG
    if _CFG is None:
        rows, vmem = 4096, 40 << 20          # safe on v7x (64 MiB physical VMEM)
        try:
            cap = getattr(pltpu.get_tpu_info(), "vmem_capacity_bytes", None)
            if cap is not None and cap >= (100 << 20):
                rows, vmem = 8192, 64 << 20  # v5e / v6e (128 MiB physical VMEM)
        except Exception:
            pass
        _CFG = (rows, vmem)
    return _CFG


def _to_slab_and_tail(x):
    """Split x into a lane-exact (rows, 128) slab plus a <128-element tail.

    No whole-tensor jnp.pad: when the element count is a multiple of 128 this is a
    metadata-only reshape; otherwise a prefix slice plus a tiny tail slice.
    """
    flat = jnp.ravel(x)
    n = flat.shape[0]
    n_main = (n // _LANES) * _LANES
    if n_main == n:
        return flat.reshape(-1, _LANES), None
    if n_main == 0:
        return None, flat
    return flat[:n_main].reshape(-1, _LANES), flat[n_main:]


def _sse_term(a, b):
    d = a.astype(jnp.float32) - b.astype(jnp.float32)
    return d * d


def _log_term(x):
    return jnp.log(x.astype(jnp.float32))


def _fused_sum_slabs(slab_terms, term_fn, *, transcendentals_per_elem=0,
                     max_block_rows=None):
    """Sum-reduce several same-shaped (rows, 128) slab tuples in ONE pallas_call.

    slab_terms: list of tuples of identically-shaped (rows, 128) arrays.
    Returns a list with one f32 scalar per term: sum(term_fn(*tuple)).
    """
    rows, lanes = slab_terms[0][0].shape
    assert lanes == _LANES
    n_terms = len(slab_terms)
    in_per_term = len(slab_terms[0])
    flat_inputs = [s for t in slab_terms for s in t]
    for s in flat_inputs:
        assert s.shape == (rows, _LANES)
    n_in = len(flat_inputs)

    cfg_rows, vmem_limit = _chip_config()
    if max_block_rows is None:
        max_block_rows = cfg_rows
    max_block_rows = max(_SUBLANES, (max_block_rows // _SUBLANES) * _SUBLANES)

    total_elems = rows * _LANES
    cost = pl.CostEstimate(
        flops=int(3 * n_terms * total_elems),
        transcendentals=int(transcendentals_per_elem * n_terms * total_elems),
        bytes_accessed=int(sum(int(np.prod(s.shape)) * s.dtype.itemsize
                               for s in flat_inputs) + 4 * n_terms),
    )

    if rows <= max_block_rows:
        # ---------- single-block path: one grid step, whole slab per input ----------
        def kernel(*refs):
            in_refs = refs[:n_in]
            out_refs = refs[n_in:]
            for t in range(n_terms):
                blocks = [in_refs[t * in_per_term + j][...]
                          for j in range(in_per_term)]
                out_refs[t][...] = jnp.sum(term_fn(*blocks), axis=(0, 1),
                                           keepdims=True)

        outs = pl.pallas_call(
            kernel,
            grid=(1,),
            in_specs=[pl.BlockSpec((rows, _LANES), lambda i: (0, 0))] * n_in,
            out_specs=[pl.BlockSpec((1, 1), lambda i: (0, 0))] * n_terms,
            out_shape=[jax.ShapeDtypeStruct((1, 1), jnp.float32)] * n_terms,
            compiler_params=pltpu.CompilerParams(
                dimension_semantics=("arbitrary",),
                vmem_limit_bytes=vmem_limit),
            cost_estimate=cost,
        )(*flat_inputs)
        return [o[0, 0] for o in outs]

    # ---------- multi-block path: (parallel, arbitrary) grid, chunked compute ----------
    block_rows = max_block_rows
    chunk_rows = _CHUNK_ROWS if block_rows % _CHUNK_ROWS == 0 else block_rows
    n_chunks = block_rows // chunk_rows
    num_blocks = pl.cdiv(rows, block_rows)
    n_par = 2 if num_blocks >= 2 else 1        # v7x: 2 TensorCores; serial (harmless) on v5e/v6e
    inner = pl.cdiv(num_blocks, n_par)
    needs_mask = (n_par * inner * block_rows) != rows

    def in_index_map(p, i):
        # Clamp so dummy / ragged steps never request an out-of-range block.
        return (jnp.minimum(p * inner + i, num_blocks - 1), 0)

    def out_index_map(p, i):
        return (p, 0)

    def kernel(*refs):
        in_refs = refs[:n_in]
        out_refs = refs[n_in:]
        p = pl.program_id(0)
        i = pl.program_id(1)
        block_row0 = (p * inner + i) * block_rows

        @pl.when(i == 0)
        def _init():
            for o in out_refs:
                o[...] = jnp.zeros_like(o)

        def accumulate(masked):
            def chunk_body(c, carry):
                start = pl.multiple_of(c * chunk_rows, chunk_rows)
                mask = None
                if masked:
                    ridx = (block_row0 + start
                            + jax.lax.broadcasted_iota(jnp.int32,
                                                       (chunk_rows, _LANES), 0))
                    mask = ridx < rows
                for t in range(n_terms):
                    vals = term_fn(*[
                        in_refs[t * in_per_term + j][pl.ds(start, chunk_rows), :]
                        for j in range(in_per_term)])
                    if mask is not None:
                        vals = jnp.where(mask, vals, 0.0)
                    # Pure VPU adds into the lane-dense (8,128) output accumulator.
                    out_refs[t][...] += vals.reshape(
                        chunk_rows // _SUBLANES, _SUBLANES, _LANES).sum(axis=0)
                return carry
            jax.lax.fori_loop(0, n_chunks, chunk_body, 0)

        if needs_mask:
            # Mask only on ragged/dummy steps; steady-state steps stay unmasked.
            ragged = block_row0 + block_rows > rows

            @pl.when(jnp.logical_not(ragged))
            def _dense():
                accumulate(False)

            @pl.when(ragged)
            def _ragged():
                accumulate(True)
        else:
            accumulate(False)

    outs = pl.pallas_call(
        kernel,
        grid=(n_par, inner),
        in_specs=[pl.BlockSpec((block_rows, _LANES), in_index_map)] * n_in,
        out_specs=[pl.BlockSpec((_SUBLANES, _LANES), out_index_map)] * n_terms,
        out_shape=[jax.ShapeDtypeStruct((n_par * _SUBLANES, _LANES),
                                        jnp.float32)] * n_terms,
        compiler_params=pltpu.CompilerParams(
            dimension_semantics=("parallel", "arbitrary"),
            vmem_limit_bytes=vmem_limit),
        cost_estimate=cost,
    )(*flat_inputs)
    # Sum the per-core (8,128) partials in plain JAX (tiny).
    return [jnp.sum(o) for o in outs]


def _fused_reduce(term_arrays, term_fn, *, transcendentals_per_elem=0,
                  max_block_rows=None):
    """Fused sum(term_fn(*arrays)) for several tuples of same-shaped arrays."""
    slab_terms, tail_terms = [], []
    for arrs in term_arrays:
        pairs = [_to_slab_and_tail(a) for a in arrs]
        slab_terms.append(tuple(s for s, _ in pairs))
        tail_terms.append(tuple(t for _, t in pairs))
    if slab_terms[0][0] is not None:
        sums = _fused_sum_slabs(slab_terms, term_fn,
                                transcendentals_per_elem=transcendentals_per_elem,
                                max_block_rows=max_block_rows)
    else:
        sums = [jnp.float32(0.0)] * len(term_arrays)
    out = []
    for s, tails in zip(sums, tail_terms):
        if tails[0] is not None:
            s = s + jnp.sum(term_fn(*tails))   # <=127-element tail in plain JAX
        out.append(s)
    return out


# Thin single-term convenience wrappers (also used for testing).
def sum_squared_diff(a, b, max_block_rows=None):
    return _fused_reduce([(a, b)], _sse_term, max_block_rows=max_block_rows)[0]


def log_sum(x, max_block_rows=None):
    return _fused_reduce([(x,)], _log_term, transcendentals_per_elem=1,
                         max_block_rows=max_block_rows)[0]


def mse(a, b):
    return sum_squared_diff(a, b) / jnp.float32(a.size)


def mse2psnr(m):
    return 10.0 * jnp.log10(1.0 / m)


def _likelihood_log_sums(likelihoods):
    """name -> sum(log(x)); plain JAX for tiny tensors, fused Pallas otherwise."""
    ls = {}
    large_groups = {}
    for k, v in likelihoods.items():
        if v.size < _SMALL_REDUCE_ELEMS:
            ls[k] = jnp.sum(jnp.log(v.astype(jnp.float32)))
        else:
            large_groups.setdefault(v.shape, []).append(k)
    for _, keys in large_groups.items():
        sums = _fused_reduce([(likelihoods[k],) for k in keys], _log_term,
                             transcendentals_per_elem=1)
        for k, s in zip(keys, sums):
            ls[k] = s
    return ls


# ----------------------------------------------------------------------------
# RateDistortionLoss forward
# ----------------------------------------------------------------------------
def rate_distortion_loss(output, target1, target2, kind=0, lmbda=0.01):
    N, _, H, W = target1.shape
    num_pixels = N * H * W
    out = {}
    if kind == 0:
        x1, x2 = output["x1_hat"], output["x2_hat"]
        if x1.shape == target1.shape == x2.shape == target2.shape:
            # Both MSE reductions fused into one pallas_call (4 inputs, 2 outputs).
            s1, s2 = _fused_reduce([(x1, target1), (x2, target2)], _sse_term)
            mse1 = s1 / jnp.float32(x1.size)
            mse2 = s2 / jnp.float32(x2.size)
        else:
            mse1 = mse(x1, target1)
            mse2 = mse(x2, target2)
        out["mse_loss"] = mse1 + mse2
        out["loss"] = lmbda * (255.0 ** 2) * out["mse_loss"]
        out["psnr1"] = mse2psnr(mse1)
        out["psnr2"] = mse2psnr(mse2)
        # TODO(synk): out['ms_ssim1/2/ms_ssim'] and out['lps1/2/lps'] require an
        # MS-SSIM library / pretrained LPIPS(AlexNet); not implemented.
    else:
        inv = 1.0 / (-math.log(2.0) * num_pixels)
        ls = _likelihood_log_sums(output["likelihoods"])
        out["bpp_loss"] = sum(v * inv for v in ls.values())
        if "y1" in ls and "z1" in ls:
            out["bpp1"] = (ls["y1"] + ls["z1"]) * inv
        if "y2" in ls and "z2" in ls:
            out["bpp2"] = (ls["y2"] + ls["z2"]) * inv
    return out


if __name__ == "__main__":
    key = jax.random.PRNGKey(0)
    ks = jax.random.split(key, 12)

    # Small NCHW shapes: batch=2, channels=4, spatial=16
    shp = (2, 4, 16, 16)
    target1 = jax.random.uniform(ks[0], shp, dtype=jnp.float32)
    target2 = jax.random.uniform(ks[1], shp, dtype=jnp.float32)
    x1_hat = jnp.clip(target1 + 0.05 * jax.random.normal(ks[2], shp), 0.0, 1.0)
    x2_hat = jnp.clip(target2 + 0.05 * jax.random.normal(ks[3], shp), 0.0, 1.0)

    likelihoods = {
        "y1": jax.random.uniform(ks[4], (2, 8, 8, 8), minval=0.05, maxval=1.0),
        "z1": jax.random.uniform(ks[5], (2, 8, 4, 4), minval=0.05, maxval=1.0),
        "y2": jax.random.uniform(ks[6], (2, 8, 8, 8), minval=0.05, maxval=1.0),
        "z2": jax.random.uniform(ks[7], (2, 8, 4, 4), minval=0.05, maxval=1.0),
    }
    output = {"x1_hat": x1_hat, "x2_hat": x2_hat, "likelihoods": likelihoods}

    # kind == 0 (distortion branch, fused Pallas MSE)
    out0 = rate_distortion_loss(output, target1, target2, kind=0, lmbda=0.01)
    jax.block_until_ready(out0["loss"])

    # kind != 0 (rate branch)
    out1 = rate_distortion_loss(output, target1, target2, kind=1, lmbda=0.01)
    jax.block_until_ready(out1["bpp_loss"])

    # Cross-check against plain-JAX reference (small shapes)
    ref_mse1 = jnp.mean((x1_hat - target1) ** 2)
    ref_mse2 = jnp.mean((x2_hat - target2) ** 2)
    np.testing.assert_allclose(
        np.asarray(out0["mse_loss"]), np.asarray(ref_mse1 + ref_mse2),
        rtol=1e-5, atol=1e-6)
    np.testing.assert_allclose(
        np.asarray(out0["loss"]),
        np.asarray(0.01 * 255.0 ** 2 * (ref_mse1 + ref_mse2)),
        rtol=1e-5, atol=1e-5)

    num_pixels = 2 * 16 * 16
    ref_bpp = sum(
        jnp.sum(jnp.log(v)) / (-math.log(2.0) * num_pixels)
        for v in likelihoods.values())
    np.testing.assert_allclose(
        np.asarray(out1["bpp_loss"]), np.asarray(ref_bpp), rtol=1e-5, atol=1e-5)

    # Larger, oddly-shaped inputs: element count not a multiple of 128 exercises the
    # slab+tail split; forcing a small block exercises the multi-block
    # (parallel x arbitrary) grid, chunked accumulate and the gated ragged mask.
    big = (2, 8, 127, 131)
    bt1 = jax.random.uniform(ks[8], big, dtype=jnp.float32)
    bt2 = jax.random.uniform(ks[9], big, dtype=jnp.float32)
    bx1 = jnp.clip(bt1 + 0.05 * jax.random.normal(ks[10], big), 0.0, 1.0)
    bx2 = jnp.clip(bt2 + 0.05 * jax.random.normal(ks[11], big), 0.0, 1.0)

    s_big = sum_squared_diff(bx1, bt1, max_block_rows=512)  # forced multi-block path
    jax.block_until_ready(s_big)
    np.testing.assert_allclose(
        np.asarray(s_big), np.asarray(jnp.sum((bx1 - bt1) ** 2)),
        rtol=5e-4, atol=1e-2)

    outb = rate_distortion_loss(
        {"x1_hat": bx1, "x2_hat": bx2, "likelihoods": {}}, bt1, bt2, kind=0)
    jax.block_until_ready(outb["mse_loss"])
    ref_b = jnp.mean((bx1 - bt1) ** 2) + jnp.mean((bx2 - bt2) ** 2)
    np.testing.assert_allclose(
        np.asarray(outb["mse_loss"]), np.asarray(ref_b), rtol=5e-4, atol=1e-7)

    big_lik = jax.random.uniform(ks[8], big, minval=0.05, maxval=1.0)
    ls_big = log_sum(big_lik, max_block_rows=512)           # forced multi-block path
    jax.block_until_ready(ls_big)
    np.testing.assert_allclose(
        np.asarray(ls_big), np.asarray(jnp.sum(jnp.log(big_lik))),
        rtol=1e-4, atol=1e-2)

    print("KERNEL_OK")
</pallas_src>

<mosaic_0001>
module attributes {stable_mosaic.version = 11 : i64} {
  func.func @kernel(%arg0: i32, %arg1: memref<16x128xf32, #tpu.memory_space<vmem>>, %arg2: memref<16x128xf32, #tpu.memory_space<vmem>>, %arg3: memref<16x128xf32, #tpu.memory_space<vmem>>, %arg4: memref<16x128xf32, #tpu.memory_space<vmem>>, %arg5: memref<1x1xf32, #tpu.memory_space<vmem>>, %arg6: memref<1x1xf32, #tpu.memory_space<vmem>>) attributes {dimension_semantics = [#tpu.dimension_semantics<arbitrary>], iteration_bounds = array<i64: 1>, scalar_prefetch = 0 : i64, scratch_operands = 0 : i64, tpu.core_type = #tpu.core_type<tc>, window_params = [{pipeline_mode = #tpu.pipeline_mode<synchronous>, transform_indices = @transform_0, window_bounds = array<i64: 16, 128>}, {pipeline_mode = #tpu.pipeline_mode<synchronous>, transform_indices = @transform_1, window_bounds = array<i64: 16, 128>}, {pipeline_mode = #tpu.pipeline_mode<synchronous>, transform_indices = @transform_2, window_bounds = array<i64: 16, 128>}, {pipeline_mode = #tpu.pipeline_mode<synchronous>, transform_indices = @transform_3, window_bounds = array<i64: 16, 128>}, {pipeline_mode = #tpu.pipeline_mode<synchronous>, transform_indices = @transform_4, window_bounds = array<i64: 1, 1>}, {pipeline_mode = #tpu.pipeline_mode<synchronous>, transform_indices = @transform_5, window_bounds = array<i64: 1, 1>}]} {
    %c0 = arith.constant 0 : index
    %c0_0 = arith.constant 0 : index
    %0 = vector.load %arg1[%c0, %c0_0] : memref<16x128xf32, #tpu.memory_space<vmem>>, vector<16x128xf32>
    %c0_1 = arith.constant 0 : index
    %c0_2 = arith.constant 0 : index
    %1 = vector.load %arg2[%c0_1, %c0_2] : memref<16x128xf32, #tpu.memory_space<vmem>>, vector<16x128xf32>
    %2 = arith.subf %0, %1 : vector<16x128xf32>
    %3 = arith.mulf %2, %2 : vector<16x128xf32>
    %4 = vector.shape_cast %3 : vector<16x128xf32> to vector<1x16x128xf32>
    %cst = arith.constant dense<0.000000e+00> : vector<1xf32>
    %5 = vector.multi_reduction <add>, %4, %cst [1, 2] : vector<1x16x128xf32> to vector<1xf32>
    %6 = vector.shape_cast %5 : vector<1xf32> to vector<1x1x1xf32>
    %7 = vector.extract %6[0, 0, 0] : f32 from vector<1x1x1xf32>
    %8 = vector.broadcast %7 : f32 to vector<1x1xf32>
    %c0_3 = arith.constant 0 : index
    %c0_4 = arith.constant 0 : index
    %9 = vector.load %arg5[%c0_3, %c0_4] : memref<1x1xf32, #tpu.memory_space<vmem>>, vector<1x1xf32>
    tpu.vector_store %arg5[%c0_3, %c0_4], %8 {strides = array<i32>} : memref<1x1xf32, #tpu.memory_space<vmem>>, vector<1x1xf32>,
    %c0_5 = arith.constant 0 : index
    %c0_6 = arith.constant 0 : index
    %10 = vector.load %arg3[%c0_5, %c0_6] : memref<16x128xf32, #tpu.memory_space<vmem>>, vector<16x128xf32>
    %c0_7 = arith.constant 0 : index
    %c0_8 = arith.constant 0 : index
    %11 = vector.load %arg4[%c0_7, %c0_8] : memref<16x128xf32, #tpu.memory_space<vmem>>, vector<16x128xf32>
    %12 = arith.subf %10, %11 : vector<16x128xf32>
    %13 = arith.mulf %12, %12 : vector<16x128xf32>
    %14 = vector.shape_cast %13 : vector<16x128xf32> to vector<1x16x128xf32>
    %cst_9 = arith.constant dense<0.000000e+00> : vector<1xf32>
    %15 = vector.multi_reduction <add>, %14, %cst_9 [1, 2] : vector<1x16x128xf32> to vector<1xf32>
    %16 = vector.shape_cast %15 : vector<1xf32> to vector<1x1x1xf32>
    %17 = vector.extract %16[0, 0, 0] : f32 from vector<1x1x1xf32>
    %18 = vector.broadcast %17 : f32 to vector<1x1xf32>
    %c0_10 = arith.constant 0 : index
    %c0_11 = arith.constant 0 : index
    %19 = vector.load %arg6[%c0_10, %c0_11] : memref<1x1xf32, #tpu.memory_space<vmem>>, vector<1x1xf32>
    tpu.vector_store %arg6[%c0_10, %c0_11], %18 {strides = array<i32>} : memref<1x1xf32, #tpu.memory_space<vmem>>, vector<1x1xf32>,
    return
  }
  func.func @transform_0(%arg0: i32) -> (i32, i32) {
    %c0_i32 = arith.constant 0 : i32
    %c0_i32_0 = arith.constant 0 : i32
    %c0_i32_1 = arith.constant 0 : i32
    return %c0_i32, %c0_i32_0 : i32, i32
  }
  func.func @transform_1(%arg0: i32) -> (i32, i32) {
    %c0_i32 = arith.constant 0 : i32
    %c0_i32_0 = arith.constant 0 : i32
    %c0_i32_1 = arith.constant 0 : i32
    return %c0_i32, %c0_i32_0 : i32, i32
  }
  func.func @transform_2(%arg0: i32) -> (i32, i32) {
    %c0_i32 = arith.constant 0 : i32
    %c0_i32_0 = arith.constant 0 : i32
    %c0_i32_1 = arith.constant 0 : i32
    return %c0_i32, %c0_i32_0 : i32, i32
  }
  func.func @transform_3(%arg0: i32) -> (i32, i32) {
    %c0_i32 = arith.constant 0 : i32
    %c0_i32_0 = arith.constant 0 : i32
    %c0_i32_1 = arith.constant 0 : i32
    return %c0_i32, %c0_i32_0 : i32, i32
  }
  func.func @transform_4(%arg0: i32) -> (i32, i32) {
    %c0_i32 = arith.constant 0 : i32
    %c0_i32_0 = arith.constant 0 : i32
    %c0_i32_1 = arith.constant 0 : i32
    return %c0_i32, %c0_i32_0 : i32, i32
  }
  func.func @transform_5(%arg0: i32) -> (i32, i32) {
    %c0_i32 = arith.constant 0 : i32
    %c0_i32_0 = arith.constant 0 : i32
    %c0_i32_1 = arith.constant 0 : i32
    return %c0_i32, %c0_i32_0 : i32, i32
  }
}

</mosaic_0001>

<bundles_post_ra>
// kernel: tpu_custom_call.1
= control target key start
LH: loop header
LB: loop body
LE: loop exit
PB: predicated region body
PF: predicated region fallthrough
CT: control target
= control target key end

     0   :  { %11 = vsyncpa [#allocation3], 0  ;;  %s382_s0 = inlined_call_operand.hbm [shape: f32[16,128], index: 0, kind: input, shape index: {}]   ;;  %s383_s1 = inlined_call_operand.hbm [shape: f32[16,128], index: 1, kind: input, shape index: {}]   ;;  %s384_s2 = inlined_call_operand.hbm [shape: f32[16,128], index: 2, kind: input, shape index: {}]   ;;  %s385_s3 = inlined_call_operand.hbm [shape: f32[16,128], index: 3, kind: input, shape index: {}]   ;;  %s386_s4 = inlined_call_operand.hbm [shape: f32[1,1], index: 4, kind: output, shape index: {0}]   ;;  %s387_s5 = inlined_call_operand.hbm [shape: f32[1,1], index: 5, kind: output, shape index: {1}]  }
   0x1   :  { %12 = vsyncpa [#allocation6], 0 }
   0x2   :  { %13 = vsyncpa [#allocation9], 0 }
   0x3   :  { %14 = vsyncpa [#allocation4], 0 }
   0x4   :  { %15 = vsyncpa [#allocation12], 0  ;;  %s33_s20 = sshll.u32 %s383_s1, 4  ;;  %s326_s21 = smov [#allocation5]   ;;  %s34_s20 = int_to_ptr.hbm [resolvable:$true] %s33_s20 }
   0x5   :  { %s35_s22 = sshll.u32 %s326_s21, 4  ;;  %s20_s25 = sshll.u32 %s382_s0, 4  ;;  %s36_s22 = int_to_ptr.vmem [resolvable:$true] %s35_s22  ;;  %s21_s25 = int_to_ptr.hbm [resolvable:$true] %s20_s25 }
   0x6   :  { %s327_s26 = smov 128   ;;  %s328_s27 = smov 8  }
   0x7   :  { %41 = dma.hbm_to_vmem [thread:$0]  %s34_s20, 256, %s36_s22, [#allocation6], %s327_s26, %s327_s26, %s328_s27  }
   0x8   :  { %s329_s28 = smov [#allocation2]   ;;  %s46_s7 = sshll.u32 %s384_s2, 4  ;;  %s47_s7 = int_to_ptr.hbm [resolvable:$true] %s46_s7 }
   0x9   :  { %s22_s29 = sshll.u32 %s329_s28, 4  ;;  %s59_s9 = sshll.u32 %s385_s3, 4  ;;  %s23_s29 = int_to_ptr.vmem [resolvable:$true] %s22_s29  ;;  %s60_s9 = int_to_ptr.hbm [resolvable:$true] %s59_s9 }
   0xa   :  { %28 = dma.hbm_to_vmem [thread:$0]  %s21_s25, 256, %s23_s29, [#allocation3], %s327_s26, %s327_s26, %s328_s27  }
   0xb   :  { %s330_s10 = smov [#allocation7]   ;;  %s331_s0 = smov [#allocation8]  }
   0xc   :  { %s48_s11 = sshll.u32 %s330_s10, 4  ;;  %s61_s12 = sshll.u32 %s331_s0, 4  ;;  %s49_s11 = int_to_ptr.vmem [resolvable:$true] %s48_s11  ;;  %s62_s12 = int_to_ptr.vmem [resolvable:$true] %s61_s12 }
   0xd   :  { %54 = dma.hbm_to_vmem [thread:$0]  %s47_s7, 256, %s49_s11, [#allocation6], %s327_s26, %s327_s26, %s328_s27  }
   0xe   :  { %67 = dma.hbm_to_vmem [thread:$0]  %s60_s9, 256, %s62_s12, [#allocation9], %s327_s26, %s327_s26, %s328_s27  }
   0xf   :  { %316 = dma.done.wait [#allocation3], 256  }
  0x10   :  { %317 = vsyncadd [#allocation3], 4294967040 }
  0x11   :  { %318 = dma.done.wait [#allocation6], 512  }
  0x12   :  { %319 = vsyncadd [#allocation6], 4294966784 }
  0x13   :  { %320 = dma.done.wait [#allocation9], 256  }
  0x14   :  { %321 = vsyncadd [#allocation9], 4294967040  ;;  %v84_v0 = vld [vmem:[#allocation2] sm:$0xff]  ;;  %v85_v1 = vld [vmem:[#allocation2 + $0x8] sm:$0xff]  ;;  %s332_s2 = smov [#allocation10]   ;;  %s132_s15 = sshll.u32 %s386_s4, 4  ;;  %s133_s15 = int_to_ptr.hbm [resolvable:$true] %s132_s15 }
  0x15   :  { %v86_v2 = vld [vmem:[#allocation5] sm:$0xff]  ;;  %v87_v3 = vld [vmem:[#allocation5 + $0x8] sm:$0xff]  ;;  %v105_v5 = vld [vmem:[#allocation7] sm:$0xff]  ;;  %s130_s3 = sshll.u32 %s332_s2, 4  ;;  %vm103_vm0 = vcmask 0   ;;  %s333_s17 = smov [#allocation11]   ;;  %s131_s3 = int_to_ptr.vmem [resolvable:$true] %s130_s3 }
  0x16   :  { %v88_v4 = vsub.f32 %v84_v0, %v86_v2  ;;  %v106_v6 = vld [vmem:[#allocation7 + $0x8] sm:$0xff]  ;;  %v89_v7 = vsub.f32 %v85_v1, %v87_v3  ;;  %v107_v8 = vld [vmem:[#allocation8] sm:$0xff]  ;;  %v108_v9 = vld [vmem:[#allocation8 + $0x8] sm:$0xff]  ;;  %s141_s18 = sshll.u32 %s333_s17, 4  ;;  %s143_s21 = sshll.u32 %s387_s5, 4  ;;  %s142_s18 = int_to_ptr.vmem [resolvable:$true] %s141_s18  ;;  %s144_s21 = int_to_ptr.hbm [resolvable:$true] %s143_s21 }
  0x17   :  { %v109_v12 = vsub.f32 %v105_v5, %v107_v8  ;;  %v110_v13 = vsub.f32 %v106_v6, %v108_v9 }
  0x18   :  { %v90_v10 = vmul.f32 %v88_v4, %v88_v4  ;;  %v91_v11 = vmul.f32 %v89_v7, %v89_v7 }
  0x19   :  { %v111_v15 = vmul.f32 %v109_v12, %v109_v12  ;;  %v112_v16 = vmul.f32 %v110_v13, %v110_v13 }
  0x1a   :  { %v92_v14 = vadd.f32 %v91_v11, %v90_v10 }
  0x1b   :  { %v113_v17 = vadd.f32 %v112_v16, %v111_v15 }
  0x1c   :  { %93 = vadd.xlane.f32.xlu0 %v92_v14 }
  0x24   :  { %114 = vadd.xlane.f32.xlu0 %v113_v17 }
  0x8f   :  { %v94_v18 = vpop.xlane.xlu0 %93 }
  0x90   :  { %v95_v19 = vrot.slane %v94_v18, 4 }
  0x92   :  { %v96_v20 = vadd.f32 %v95_v19, %v94_v18 }
  0x94   :  { %v97_v21 = vrot.slane %v96_v20, 2 }
  0x96   :  { %v98_v22 = vadd.f32 %v97_v21, %v96_v20 }
  0x97   :  { %v115_v23 = vpop.xlane.xlu0 %114 }
  0x98   :  { %v116_v24 = vrot.slane %v115_v23, 4  ;;  %v99_v25 = vrot.slane %v98_v22, 1 }
  0x9a   :  { %v117_v26 = vadd.f32 %v116_v24, %v115_v23  ;;  %v100_v27 = vadd.f32 %v99_v25, %v98_v22 }
  0x9c   :  { %v118_v28 = vrot.slane %v117_v26, 2  ;;  %160 = vpush %v100_v27 }
  0x9e   :  { %v119_v29 = vadd.f32 %v118_v28, %v117_v26 }
  0xa0   :  { %v120_v30 = vrot.slane %v119_v29, 1 }
  0xa2   :  { %v121_v31 = vadd.f32 %v120_v30, %v119_v29 }
  0xa4   :  { %162 = vpush %v121_v31 }
  0xcd   :  { %s161_s16 = spop %160 }
  0xce   :  { %v102_v32 = vstv %s161_s16 }
  0xcf   :  { %104 = vst.msk [vmem:[#allocation10] sm:$0x1] %vm103_vm0, %v102_v32 }
  0xd0   :  { %135 = dma.vmem_to_hbm [thread:$0]  %s131_s3, 16, %s133_s15, [#allocation4]  }
  0xd5   :  { %s163_s22 = spop %162 }
  0xd6   :  { %v123_v33 = vstv %s163_s22 }
  0xd7   :  { %124 = vst.msk [vmem:[#allocation11] sm:$0x1] %vm103_vm0, %v123_v33 }
  0xd8   :  { %146 = dma.vmem_to_hbm [thread:$0]  %s142_s18, 16, %s144_s21, [#allocation12]  }
  0xd9   :  { %322 = dma.done.wait [#allocation4], 16  }
  0xda   :  { %323 = vsyncadd [#allocation4], 4294967280 }
  0xdb   :  { %324 = dma.done.wait [#allocation12], 16  }
  0xdc   :  { %325 = vsyncadd [#allocation12], 4294967280 }
  0xdd   :  { %155 = vsyncpa [#allocation3], 1 }
  0xde   :  { %156 = vsyncpa [#allocation6], 1 }
  0xdf   :  { %157 = vsyncpa [#allocation9], 1 }
  0xe0   :  { %158 = vsyncpa [#allocation4], 1 }
  0xe1   :  { %159 = vsyncpa [#allocation12], 1 }

</bundles_post_ra>
